<compile_context>
chip_gen: v7x
topology: tpu7x:2x2x1
jax: 0.10.0
libtpu: 0.0.40
codegen_flags: <defaults>
</compile_context>

<pallas_src>
import functools

import jax
import jax.numpy as jnp
from jax import lax
from jax.experimental import pallas as pl
from jax.experimental.pallas import tpu as pltpu

# ---- small, shape-consistent hyper-params ----
# fc1 in-features = (hidden//4) * (kernel_size//8) forces seq_len == kernel_size.
IN_DIM = 4
OUT_DIM = 5
HIDDEN = 32           # hidden_dim
KSIZE = 16            # kernel_size (== sequence length)
L = KSIZE
BATCH = 18            # demo batch: exercises multiple batch blocks + padding

K1, K2, K3 = KSIZE, KSIZE // 2, KSIZE // 4
H1, H2, H3 = HIDDEN, HIDDEN // 2, HIDDEN // 4
H8 = HIDDEN // 8
# PyTorch Conv1d(padding='same'): left = (K-1)//2, right = (K-1) - left
PL1, PR1 = (K1 - 1) // 2, (K1 - 1) - (K1 - 1) // 2    # 7, 8
PL2, PR2 = (K2 - 1) // 2, (K2 - 1) - (K2 - 1) // 2    # 3, 4
PL3, PR3 = (K3 - 1) // 2, (K3 - 1) - (K3 - 1) // 2    # 1, 2
L1, L2, L3, L4 = L, L // 2, L // 4, L // 8            # 16, 8, 4, 2
LANE_OUT = 128        # lane-dense output width (classes padded up, sliced outside)
B_BLK = 8             # batch rows per grid step (multiple of 8)


def cnn1d_kernel(x_ref, w1_ref, b1_ref, w2_ref, b2_ref, w3_ref, b3_ref,
                 fw1_ref, fb1_ref, fw2_ref, fb2_ref, out_ref):
    f32 = jnp.float32

    def conv_relu_pool(h, w_ref, b_ref, half):
        # Conv1d('same') as one block-Toeplitz matmul (padding folded into the
        # weight).  Output lanes are parity-split (even time positions in
        # [:half], odd in [half:]), so MaxPool1d(2) is a single vectorized max
        # of the two aligned lane halves over the whole batch block.
        y = jnp.maximum(
            jnp.dot(h, w_ref[...], preferred_element_type=f32) + b_ref[...],
            0.0)
        return jnp.maximum(y[:, :half], y[:, half:])

    h = x_ref[...]                                      # (B_BLK, IN_DIM*L)
    # TODO(synk): Dropout layers are identity in eval mode; training-time masks
    # would need pltpu.prng_seed / pltpu.prng_random_bits here.
    h = conv_relu_pool(h, w1_ref, b1_ref, H1 * L2)      # (B_BLK, 256)
    h = conv_relu_pool(h, w2_ref, b2_ref, H2 * L3)      # (B_BLK, 64)
    h = conv_relu_pool(h, w3_ref, b3_ref, H3 * L4)      # (B_BLK, 16)
    # pooled lane order == torch Flatten order -> fc1 weight needs no permutation
    h = jnp.maximum(
        jnp.dot(h, fw1_ref[...], preferred_element_type=f32) + fb1_ref[...],
        0.0)                                            # (B_BLK, H8)
    logits = (jnp.dot(h, fw2_ref[...], preferred_element_type=f32)
              + fb2_ref[...])                           # (B_BLK, 128); pads at -1e30
    e = jnp.exp(logits - jnp.max(logits, axis=-1, keepdims=True))
    out_ref[...] = e / jnp.sum(e, axis=-1, keepdims=True)   # exact softmax


# ----------------------------- parameter prep ------------------------------

def make_params(key):
    """Deterministic init (uniform(-0.1, 0.1)), torch-layout weights."""
    ks = jax.random.split(key, 10)
    u = lambda k, shape: jax.random.uniform(k, shape, jnp.float32, -0.1, 0.1)
    w1 = u(ks[0], (H1, IN_DIM, K1)); b1 = u(ks[1], (H1,))
    w2 = u(ks[2], (H2, H1, K2));     b2 = u(ks[3], (H2,))
    w3 = u(ks[4], (H3, H2, K3));     b3 = u(ks[5], (H3,))
    fw1 = u(ks[6], (H8, H3 * L4));   fb1 = u(ks[7], (H8,))
    fw2 = u(ks[8], (OUT_DIM, H8));   fb2 = u(ks[9], (OUT_DIM,))
    return (w1, b1, w2, b2, w3, b3, fw1, fb1, fw2, fb2)


def conv_toeplitz_parity(w, l_in, pad_left):
    """Block-Toeplitz matrix for Conv1d('same', stride=1) with torch weight w.

    Input lane layout :  c * l_in + ti                (dense, channel-major)
    Output lane layout:  p * (Cout*l_in//2) + o*(l_in//2) + (to//2),  p = to % 2
    ('parity split': even output times in the first half, odd in the second,
     so MaxPool1d(2) becomes max of the two halves and the pooled result is
     again dense channel-major.)
    """
    cout, cin, ksz = w.shape
    lh = l_in // 2
    ti = jnp.arange(l_in)
    to = jnp.arange(l_in)
    k = ti[:, None] - to[None, :] + pad_left            # tap index, (ti, to)
    valid = (k >= 0) & (k < ksz)
    kc = jnp.clip(k, 0, ksz - 1)
    wt = jnp.transpose(w, (1, 2, 0))                     # (Cin, K, Cout)
    g = jnp.where(valid[None, :, :, None], wt[:, kc, :], 0.0)  # (c, ti, to, o)
    g = g.reshape(cin, l_in, lh, 2, cout)                # to -> (j, p)
    g = jnp.transpose(g, (0, 1, 3, 4, 2))                # (c, ti, p, o, j)
    return g.reshape(cin * l_in, cout * l_in)


def prepare_params(params):
    """One-time kernel-layout prep (hoisted out of the jitted forward)."""
    (w1, b1, w2, b2, w3, b3, fw1, fb1, fw2, fb2) = params
    W1T = conv_toeplitz_parity(w1, L1, PL1)              # (64, 512)
    W2T = conv_toeplitz_parity(w2, L2, PL2)              # (256, 128)
    W3T = conv_toeplitz_parity(w3, L3, PL3)              # (64, 32)
    # biases broadcast over the parity-split time lanes of each channel
    b1r = jnp.tile(jnp.repeat(b1, L2), 2)[None, :]       # (1, 512)
    b2r = jnp.tile(jnp.repeat(b2, L3), 2)[None, :]       # (1, 128)
    b3r = jnp.tile(jnp.repeat(b3, L4), 2)[None, :]       # (1, 32)
    FW1T = fw1.T                                         # (16, 4): flatten order matches
    fb1r = fb1[None, :]                                  # (1, 4)
    # lane-dense fc2: pad to 128 classes with zero weights and -1e30 bias so the
    # softmax over 128 lanes equals the softmax over the real OUT_DIM classes.
    FW2Tp = jnp.zeros((H8, LANE_OUT), jnp.float32).at[:, :OUT_DIM].set(fw2.T)
    fb2p = jnp.full((LANE_OUT,), -1e30, jnp.float32).at[:OUT_DIM].set(fb2)[None, :]
    return (W1T, b1r, W2T, b2r, W3T, b3r, FW1T, fb1r, FW2Tp, fb2p)


# --------------------------------- forward ---------------------------------

@functools.partial(jax.jit, static_argnames=("block_b",))
def cnn1d_forward(x, kernel_params, *, block_b=B_BLK):
    """x: (B, IN_DIM, L) torch NCL layout. Returns (B, OUT_DIM) softmax probs."""
    assert block_b % 8 == 0
    (W1T, b1r, W2T, b2r, W3T, b3r, FW1T, fb1r, FW2Tp, fb2p) = kernel_params
    B = x.shape[0]

    # Per-call plumbing is only a free channel-major flatten + batch padding
    # (no im2col expansion of the input).
    x_flat = x.reshape(B, IN_DIM * L)
    n_blk = pl.cdiv(B, block_b)
    b_pad = n_blk * block_b
    if b_pad != B:
        x_flat = jnp.pad(x_flat, ((0, b_pad - B), (0, 0)))

    args = [x_flat, W1T, b1r, W2T, b2r, W3T, b3r, FW1T, fb1r, FW2Tp, fb2p]
    # Weights/biases stay resident in VMEM across all batch blocks.
    resident = [pl.BlockSpec(a.shape, lambda i: (0, 0)) for a in args[1:]]

    out = pl.pallas_call(
        cnn1d_kernel,
        out_shape=jax.ShapeDtypeStruct((b_pad, LANE_OUT), jnp.float32),
        grid_spec=pltpu.PrefetchScalarGridSpec(
            num_scalar_prefetch=0,
            grid=(n_blk,),                       # batch-block axis
            in_specs=[pl.BlockSpec((block_b, IN_DIM * L), lambda i: (i, 0))]
                     + resident,
            out_specs=pl.BlockSpec((block_b, LANE_OUT), lambda i: (i, 0)),
        ),
        compiler_params=pltpu.CompilerParams(
            dimension_semantics=("parallel",),   # v7x: 2 TCs split batch blocks
            vmem_limit_bytes=32 * 1024 * 1024),
    )(*args)
    return out[:B, :OUT_DIM]


# ------------------------------- reference ---------------------------------

def torch_reference(x, params):
    """Independent pure-JAX reference mirroring the PyTorch forward (eval mode)."""
    (w1, b1, w2, b2, w3, b3, fw1, fb1, fw2, fb2) = params
    hp = lax.Precision.HIGHEST

    def conv1d_same(h, w, bias, pad_l, pad_r):
        y = lax.conv_general_dilated(h, w, window_strides=(1,),
                                     padding=[(pad_l, pad_r)],
                                     dimension_numbers=('NCH', 'OIH', 'NCH'),
                                     precision=hp)
        return y + bias[None, :, None]

    def maxpool2(h):
        Bx, C, T = h.shape
        return jnp.max(h.reshape(Bx, C, T // 2, 2), axis=-1)

    h = maxpool2(jax.nn.relu(conv1d_same(x, w1, b1, PL1, PR1)))
    h = maxpool2(jax.nn.relu(conv1d_same(h, w2, b2, PL2, PR2)))
    h = maxpool2(jax.nn.relu(conv1d_same(h, w3, b3, PL3, PR3)))
    flat = h.reshape(h.shape[0], -1)
    h = jax.nn.relu(jnp.dot(flat, fw1.T, precision=hp) + fb1)
    logits = jnp.dot(h, fw2.T, precision=hp) + fb2
    return jax.nn.softmax(logits, axis=1)


if __name__ == "__main__":
    key = jax.random.PRNGKey(0)
    kx, kp = jax.random.split(key)
    x = jax.random.normal(kx, (BATCH, IN_DIM, L), dtype=jnp.float32)
    params = make_params(kp)
    kparams = prepare_params(params)        # one-time layout prep, outside jit

    out = jax.block_until_ready(cnn1d_forward(x, kparams))
    ref = torch_reference(x, params)

    assert out.shape == (BATCH, OUT_DIM), out.shape
    err = float(jnp.max(jnp.abs(out - ref)))
    assert err < 1e-3, f"mismatch vs reference: {err}"
    print("KERNEL_OK")
</pallas_src>

<mosaic_0001>
module attributes {stable_mosaic.version = 11 : i64} {
  func.func @cnn1d_kernel(%arg0: i32, %arg1: memref<8x64xf32, #tpu.memory_space<vmem>>, %arg2: memref<64x512xf32, #tpu.memory_space<vmem>>, %arg3: memref<1x512xf32, #tpu.memory_space<vmem>>, %arg4: memref<256x128xf32, #tpu.memory_space<vmem>>, %arg5: memref<1x128xf32, #tpu.memory_space<vmem>>, %arg6: memref<64x32xf32, #tpu.memory_space<vmem>>, %arg7: memref<1x32xf32, #tpu.memory_space<vmem>>, %arg8: memref<16x4xf32, #tpu.memory_space<vmem>>, %arg9: memref<1x4xf32, #tpu.memory_space<vmem>>, %arg10: memref<4x128xf32, #tpu.memory_space<vmem>>, %arg11: memref<1x128xf32, #tpu.memory_space<vmem>>, %arg12: memref<8x128xf32, #tpu.memory_space<vmem>>) attributes {dimension_semantics = [#tpu.dimension_semantics<parallel>], iteration_bounds = array<i64: 3>, scalar_prefetch = 0 : i64, scratch_operands = 0 : i64, tpu.core_type = #tpu.core_type<tc>, window_params = [{transform_indices = @transform_0, window_bounds = array<i64: 8, 64>}, {pipeline_mode = #tpu.pipeline_mode<synchronous>, transform_indices = @transform_1, window_bounds = array<i64: 64, 512>}, {pipeline_mode = #tpu.pipeline_mode<synchronous>, transform_indices = @transform_2, window_bounds = array<i64: 1, 512>}, {pipeline_mode = #tpu.pipeline_mode<synchronous>, transform_indices = @transform_3, window_bounds = array<i64: 256, 128>}, {pipeline_mode = #tpu.pipeline_mode<synchronous>, transform_indices = @transform_4, window_bounds = array<i64: 1, 128>}, {pipeline_mode = #tpu.pipeline_mode<synchronous>, transform_indices = @transform_5, window_bounds = array<i64: 64, 32>}, {pipeline_mode = #tpu.pipeline_mode<synchronous>, transform_indices = @transform_6, window_bounds = array<i64: 1, 32>}, {pipeline_mode = #tpu.pipeline_mode<synchronous>, transform_indices = @transform_7, window_bounds = array<i64: 16, 4>}, {pipeline_mode = #tpu.pipeline_mode<synchronous>, transform_indices = @transform_8, window_bounds = array<i64: 1, 4>}, {pipeline_mode = #tpu.pipeline_mode<synchronous>, transform_indices = @transform_9, window_bounds = array<i64: 4, 128>}, {pipeline_mode = #tpu.pipeline_mode<synchronous>, transform_indices = @transform_10, window_bounds = array<i64: 1, 128>}, {transform_indices = @transform_11, window_bounds = array<i64: 8, 128>}]} {
    %c0 = arith.constant 0 : index
    %c0_0 = arith.constant 0 : index
    %0 = vector.load %arg1[%c0, %c0_0] : memref<8x64xf32, #tpu.memory_space<vmem>>, vector<8x64xf32>
    %c0_1 = arith.constant 0 : index
    %c0_2 = arith.constant 0 : index
    %1 = vector.load %arg2[%c0_1, %c0_2] : memref<64x512xf32, #tpu.memory_space<vmem>>, vector<64x512xf32>
    %cst = arith.constant dense<0.000000e+00> : vector<8x512xf32>
    %2 = tpu.matmul %0, %1, %cst {dimension_numbers = #tpu.dot_dimension_numbers<[1], [0], [0], [1], [0, 0, 1, 1], [], []>} : vector<8x64xf32>, vector<64x512xf32>, vector<8x512xf32> -> vector<8x512xf32>
    %c0_3 = arith.constant 0 : index
    %c0_4 = arith.constant 0 : index
    %3 = vector.load %arg3[%c0_3, %c0_4] : memref<1x512xf32, #tpu.memory_space<vmem>>, vector<1x512xf32>
    %4 = vector.broadcast %3 : vector<1x512xf32> to vector<8x512xf32>
    %5 = arith.addf %2, %4 : vector<8x512xf32>
    %cst_5 = arith.constant 0.000000e+00 : f32
    %6 = vector.broadcast %cst_5 : f32 to vector<8x512xf32>
    %7 = arith.maximumf %5, %6 : vector<8x512xf32>
    %8 = vector.extract_strided_slice %7 {offsets = [0, 0], sizes = [8, 256], strides = [1, 1]} : vector<8x512xf32> to vector<8x256xf32>
    %9 = vector.extract_strided_slice %7 {offsets = [0, 256], sizes = [8, 256], strides = [1, 1]} : vector<8x512xf32> to vector<8x256xf32>
    %10 = arith.maximumf %8, %9 : vector<8x256xf32>
    %c0_6 = arith.constant 0 : index
    %c0_7 = arith.constant 0 : index
    %11 = vector.load %arg4[%c0_6, %c0_7] : memref<256x128xf32, #tpu.memory_space<vmem>>, vector<256x128xf32>
    %cst_8 = arith.constant dense<0.000000e+00> : vector<8x128xf32>
    %12 = tpu.matmul %10, %11, %cst_8 {dimension_numbers = #tpu.dot_dimension_numbers<[1], [0], [0], [1], [0, 0, 1, 1], [], []>} : vector<8x256xf32>, vector<256x128xf32>, vector<8x128xf32> -> vector<8x128xf32>
    %c0_9 = arith.constant 0 : index
    %c0_10 = arith.constant 0 : index
    %13 = vector.load %arg5[%c0_9, %c0_10] : memref<1x128xf32, #tpu.memory_space<vmem>>, vector<1x128xf32>
    %14 = vector.broadcast %13 : vector<1x128xf32> to vector<8x128xf32>
    %15 = arith.addf %12, %14 : vector<8x128xf32>
    %cst_11 = arith.constant 0.000000e+00 : f32
    %16 = vector.broadcast %cst_11 : f32 to vector<8x128xf32>
    %17 = arith.maximumf %15, %16 : vector<8x128xf32>
    %18 = vector.extract_strided_slice %17 {offsets = [0, 0], sizes = [8, 64], strides = [1, 1]} : vector<8x128xf32> to vector<8x64xf32>
    %19 = vector.extract_strided_slice %17 {offsets = [0, 64], sizes = [8, 64], strides = [1, 1]} : vector<8x128xf32> to vector<8x64xf32>
    %20 = arith.maximumf %18, %19 : vector<8x64xf32>
    %c0_12 = arith.constant 0 : index
    %c0_13 = arith.constant 0 : index
    %21 = vector.load %arg6[%c0_12, %c0_13] : memref<64x32xf32, #tpu.memory_space<vmem>>, vector<64x32xf32>
    %cst_14 = arith.constant dense<0.000000e+00> : vector<8x32xf32>
    %22 = tpu.matmul %20, %21, %cst_14 {dimension_numbers = #tpu.dot_dimension_numbers<[1], [0], [0], [1], [0, 0, 1, 1], [], []>} : vector<8x64xf32>, vector<64x32xf32>, vector<8x32xf32> -> vector<8x32xf32>
    %c0_15 = arith.constant 0 : index
    %c0_16 = arith.constant 0 : index
    %23 = vector.load %arg7[%c0_15, %c0_16] : memref<1x32xf32, #tpu.memory_space<vmem>>, vector<1x32xf32>
    %24 = vector.broadcast %23 : vector<1x32xf32> to vector<8x32xf32>
    %25 = arith.addf %22, %24 : vector<8x32xf32>
    %cst_17 = arith.constant 0.000000e+00 : f32
    %26 = vector.broadcast %cst_17 : f32 to vector<8x32xf32>
    %27 = arith.maximumf %25, %26 : vector<8x32xf32>
    %28 = vector.extract_strided_slice %27 {offsets = [0, 0], sizes = [8, 16], strides = [1, 1]} : vector<8x32xf32> to vector<8x16xf32>
    %29 = vector.extract_strided_slice %27 {offsets = [0, 16], sizes = [8, 16], strides = [1, 1]} : vector<8x32xf32> to vector<8x16xf32>
    %30 = arith.maximumf %28, %29 : vector<8x16xf32>
    %c0_18 = arith.constant 0 : index
    %c0_19 = arith.constant 0 : index
    %31 = vector.load %arg8[%c0_18, %c0_19] : memref<16x4xf32, #tpu.memory_space<vmem>>, vector<16x4xf32>
    %cst_20 = arith.constant dense<0.000000e+00> : vector<8x4xf32>
    %32 = tpu.matmul %30, %31, %cst_20 {dimension_numbers = #tpu.dot_dimension_numbers<[1], [0], [0], [1], [0, 0, 1, 1], [], []>} : vector<8x16xf32>, vector<16x4xf32>, vector<8x4xf32> -> vector<8x4xf32>
    %c0_21 = arith.constant 0 : index
    %c0_22 = arith.constant 0 : index
    %33 = vector.load %arg9[%c0_21, %c0_22] : memref<1x4xf32, #tpu.memory_space<vmem>>, vector<1x4xf32>
    %34 = vector.broadcast %33 : vector<1x4xf32> to vector<8x4xf32>
    %35 = arith.addf %32, %34 : vector<8x4xf32>
    %cst_23 = arith.constant 0.000000e+00 : f32
    %36 = vector.broadcast %cst_23 : f32 to vector<8x4xf32>
    %37 = arith.maximumf %35, %36 : vector<8x4xf32>
    %c0_24 = arith.constant 0 : index
    %c0_25 = arith.constant 0 : index
    %38 = vector.load %arg10[%c0_24, %c0_25] : memref<4x128xf32, #tpu.memory_space<vmem>>, vector<4x128xf32>
    %cst_26 = arith.constant dense<0.000000e+00> : vector<8x128xf32>
    %39 = tpu.matmul %37, %38, %cst_26 {dimension_numbers = #tpu.dot_dimension_numbers<[1], [0], [0], [1], [0, 0, 1, 1], [], []>} : vector<8x4xf32>, vector<4x128xf32>, vector<8x128xf32> -> vector<8x128xf32>
    %c0_27 = arith.constant 0 : index
    %c0_28 = arith.constant 0 : index
    %40 = vector.load %arg11[%c0_27, %c0_28] : memref<1x128xf32, #tpu.memory_space<vmem>>, vector<1x128xf32>
    %41 = vector.broadcast %40 : vector<1x128xf32> to vector<8x128xf32>
    %42 = arith.addf %39, %41 : vector<8x128xf32>
    %cst_29 = arith.constant dense<0xFF800000> : vector<8xf32>
    %43 = vector.multi_reduction <maximumf>, %42, %cst_29 [1] : vector<8x128xf32> to vector<8xf32>
    %44 = vector.shape_cast %43 : vector<8xf32> to vector<8x1xf32>
    %45 = vector.broadcast %44 : vector<8x1xf32> to vector<8x128xf32>
    %46 = arith.subf %42, %45 : vector<8x128xf32>
    %47 = math.exp %46 : vector<8x128xf32>
    %cst_30 = arith.constant dense<0.000000e+00> : vector<8xf32>
    %48 = vector.multi_reduction <add>, %47, %cst_30 [1] : vector<8x128xf32> to vector<8xf32>
    %49 = vector.shape_cast %48 : vector<8xf32> to vector<8x1xf32>
    %50 = vector.broadcast %49 : vector<8x1xf32> to vector<8x128xf32>
    %51 = arith.divf %47, %50 : vector<8x128xf32>
    %c0_31 = arith.constant 0 : index
    %c0_32 = arith.constant 0 : index
    %52 = vector.load %arg12[%c0_31, %c0_32] : memref<8x128xf32, #tpu.memory_space<vmem>>, vector<8x128xf32>
    tpu.vector_store %arg12[%c0_31, %c0_32], %51 {strides = array<i32>} : memref<8x128xf32, #tpu.memory_space<vmem>>, vector<8x128xf32>,
    return
  }
  func.func @transform_0(%arg0: i32) -> (i32, i32) {
    %c0_i32 = arith.constant 0 : i32
    %c0_i32_0 = arith.constant 0 : i32
    return %arg0, %c0_i32 : i32, i32
  }
  func.func @transform_1(%arg0: i32) -> (i32, i32) {
    %c0_i32 = arith.constant 0 : i32
    %c0_i32_0 = arith.constant 0 : i32
    %c0_i32_1 = arith.constant 0 : i32
    return %c0_i32, %c0_i32_0 : i32, i32
  }
  func.func @transform_2(%arg0: i32) -> (i32, i32) {
    %c0_i32 = arith.constant 0 : i32
    %c0_i32_0 = arith.constant 0 : i32
    %c0_i32_1 = arith.constant 0 : i32
    return %c0_i32, %c0_i32_0 : i32, i32
  }
  func.func @transform_3(%arg0: i32) -> (i32, i32) {
    %c0_i32 = arith.constant 0 : i32
    %c0_i32_0 = arith.constant 0 : i32
    %c0_i32_1 = arith.constant 0 : i32
    return %c0_i32, %c0_i32_0 : i32, i32
  }
  func.func @transform_4(%arg0: i32) -> (i32, i32) {
    %c0_i32 = arith.constant 0 : i32
    %c0_i32_0 = arith.constant 0 : i32
    %c0_i32_1 = arith.constant 0 : i32
    return %c0_i32, %c0_i32_0 : i32, i32
  }
  func.func @transform_5(%arg0: i32) -> (i32, i32) {
    %c0_i32 = arith.constant 0 : i32
    %c0_i32_0 = arith.constant 0 : i32
    %c0_i32_1 = arith.constant 0 : i32
    return %c0_i32, %c0_i32_0 : i32, i32
  }
  func.func @transform_6(%arg0: i32) -> (i32, i32) {
    %c0_i32 = arith.constant 0 : i32
    %c0_i32_0 = arith.constant 0 : i32
    %c0_i32_1 = arith.constant 0 : i32
    return %c0_i32, %c0_i32_0 : i32, i32
  }
  func.func @transform_7(%arg0: i32) -> (i32, i32) {
    %c0_i32 = arith.constant 0 : i32
    %c0_i32_0 = arith.constant 0 : i32
    %c0_i32_1 = arith.constant 0 : i32
    return %c0_i32, %c0_i32_0 : i32, i32
  }
  func.func @transform_8(%arg0: i32) -> (i32, i32) {
    %c0_i32 = arith.constant 0 : i32
    %c0_i32_0 = arith.constant 0 : i32
    %c0_i32_1 = arith.constant 0 : i32
    return %c0_i32, %c0_i32_0 : i32, i32
  }
  func.func @transform_9(%arg0: i32) -> (i32, i32) {
    %c0_i32 = arith.constant 0 : i32
    %c0_i32_0 = arith.constant 0 : i32
    %c0_i32_1 = arith.constant 0 : i32
    return %c0_i32, %c0_i32_0 : i32, i32
  }
  func.func @transform_10(%arg0: i32) -> (i32, i32) {
    %c0_i32 = arith.constant 0 : i32
    %c0_i32_0 = arith.constant 0 : i32
    %c0_i32_1 = arith.constant 0 : i32
    return %c0_i32, %c0_i32_0 : i32, i32
  }
  func.func @transform_11(%arg0: i32) -> (i32, i32) {
    %c0_i32 = arith.constant 0 : i32
    %c0_i32_0 = arith.constant 0 : i32
    return %arg0, %c0_i32 : i32, i32
  }
}

</mosaic_0001>

<bundles_post_ra>
// kernel: cnn1d_forward.1
= control target key start
LH: loop header
LB: loop body
LE: loop exit
PB: predicated region body
PF: predicated region fallthrough
CT: control target
= control target key end

     0   :  { %16 = vsyncpa [#allocation3], 0  ;;  %s1376_s17 = smov 0   ;;  %s1597_s0 = inlined_call_operand.vmem [shape: f32[24,64], index: 0, kind: input, shape index: {}]   ;;  %s1598_s1 = inlined_call_operand.vmem [shape: f32[64,512], index: 1, kind: input, shape index: {}]   ;;  %s1599_s2 = inlined_call_operand.vmem [shape: f32[1,512], index: 2, kind: input, shape index: {}]   ;;  %s1600_s3 = inlined_call_operand.hbm [shape: f32[256,128], index: 3, kind: input, shape index: {}]   ;;  %s1601_s4 = inlined_call_operand.vmem [shape: f32[1,128], index: 4, kind: input, shape index: {}]   ;;  %s1602_s5 = inlined_call_operand.vmem [shape: f32[64,32], index: 5, kind: input, shape index: {}]   ;;  %s1603_s6 = inlined_call_operand.vmem [shape: f32[1,32], index: 6, kind: input, shape index: {}]   ;;  %s1604_s7 = inlined_call_operand.vmem [shape: f32[16,4], index: 7, kind: input, shape index: {}]   ;;  %s1605_s8 = inlined_call_operand.vmem [shape: f32[1,4], index: 8, kind: input, shape index: {}]   ;;  %s1606_s9 = inlined_call_operand.vmem [shape: f32[4,128], index: 9, kind: input, shape index: {}]   ;;  %s1607_s10 = inlined_call_operand.vmem [shape: f32[1,128], index: 10, kind: input, shape index: {}]   ;;  %s1608_s11 = inlined_call_operand.vmem [shape: f32[24,128], index: 11, kind: output, shape index: {}]  }
   0x1 LB: > { %s1382_s18 = sadd.s32 4294967295, %s1306_s17   ;;  %p1060_p0 = scmp.ge.s32.totalorder %s1306_s17, 1  ;;  %s1306_s17 = sphi %s1376_s17, %s22_s17  }
   0x2   : > { %p289_p1 = scmp.lt.s32.totalorder %s1306_s17, 4  ;;  %s1308_s19 = smov [#allocation2]  }
   0x3   : > { %s307_s20 = sshll.u32 %s1308_s19, 4  ;;  %p1609_p3 = scmp.eq.s32.totalorder %s1382_s18, 0  ;;  %s308_s20 = int_to_ptr.vmem [resolvable:$true] %s307_s20 }
   0x4   : > { %p1386_p2 = pnand %p1060_p0, %p289_p1  ;;  %s1268_s25 = scalar_lea.hbm %s1600_s3, 4096 }
   0x5   : > { %p1269_p6 = scmp.ne.s32.totalorder %s1600_s3, %s1268_s25  ;;  %p1275_p10 = scmp.lt.u32.totalorder %s1268_s25, %s1600_s3 }
   0x6   : > { %s1611_s21 = scalar_select %p1386_p2, 1, 0 }
   0x7   : > { %p1242_p4 = pneg %p1386_p2 }
   0x9   : > { %p1395_p5 = pnand %p1609_p3, %p1242_p4 }
   0xb   : > { %p1270_p7 = pneg %p1395_p5 }
   0xd   : > { %p1271_p8 = pnand %p1270_p7, %p1269_p6 }
   0xf   : > { %p1272_p9 = pneg %p1271_p8 }
  0x11   : > { %p1277_p11 = pnand %p1275_p10, %p1272_p9 }
  0x13   : > { %1280 = shalt.err (!%p1277_p11)
}
  0x14   : > { %s1281_s30 = scalar_lea.vmem %s308_s20, 4096  ;;  %p1289_p1 = scmp.lt.s32.totalorder %s308_s20, %s308_s20 }
  0x15   : > { %p1282_p12 = scmp.ne.s32.totalorder %s308_s20, %s1281_s30  ;;  %p1290_p4 = scmp.lt.s32.totalorder %s1281_s30, %s1281_s30 }
  0x17   : > { %p1284_p13 = pnand %p1282_p12, %p1270_p7  ;;  %p1291_p3 = por %p1290_p4, %p1289_p1 }
  0x19   : > { %p1285_p0 = pneg %p1284_p13 }
  0x1b   : > { %p1292_p2 = pnand %p1291_p3, %p1285_p0 }
  0x1d   : > { %1295 = shalt.err (!%p1292_p2)
}
  0x1e   : > { %s1309_s12 = smov 128   ;;  %s1310_s13 = smov 8  }
  0x1f   : > { %1245 = dma.hbm_to_vmem [thread:$0]  (!%p1395_p5), %s1600_s3, 4096, %s308_s20, [#allocation3], %s1309_s12, %s1309_s12, %s1310_s13  }
  0x20   : > { %p1613_p6 = scmp.ne.s32.totalorder %s1611_s21, 0 }
  0x21   : > { %p1614_p8 = scmp.eq.s32.totalorder (!%p1613_p6), %s1382_s18, 0 }
  0x22   : > { %351 = sbr.rel (%p1613_p6) target bundleno = 1695 (0x69f), region = 64 }
  0x29   : > { %1301 = dma.done.wait (%p1614_p8), [#allocation3], 4096   ;;  %p1615_p7 = pmov %p1614_p8 }
  0x2a   : > { %v1311_v0 = vmov 0.0   ;;  %v399_v1 = vld [vmem:[%s1598_s1 + $0x8] sm:$0xff]  ;;  %v401_v3 = vld [vmem:[%s1598_s1 + $0x18] sm:$0xff]  ;;  %v398_v6 = vld [vmem:[%s1598_s1] sm:$0xff]  ;;  %p389_p2 = scmp.lt.s32.totalorder %s1382_s18, 2  ;;  %vm452_vm0 = vcmask 523264  }
  0x2b   : > { %1303 = vsyncadd (%p1615_p7), [#allocation3], 4294963200  ;;  %520 = vmatprep.mubr.f32.mxu0 %v1311_v0  ;;  %591 = vmatprep.mubr.f32.mxu1 %v1311_v0  ;;  %v403_v2 = vld [vmem:[%s1598_s1 + $0x28] sm:$0xff]  ;;  %v405_v5 = vld [vmem:[%s1598_s1 + $0x38] sm:$0xff]  ;;  %vm1313_vm1 = vmmov 0   ;;  %s1314_s21 = smov 64  }
  0x2c   : > { %v1159_v4 = vpack.c.bf16 %v403_v2, %v399_v1  ;;  %v402_v7 = vld [vmem:[%s1598_s1 + $0x20] sm:$0xff]  ;;  %v1175_v8 = vpack.c.bf16 %v405_v5, %v401_v3  ;;  %v400_v10 = vld [vmem:[%s1598_s1 + $0x10] sm:$0xff]  ;;  %v407_v12 = vld [vmem:[%s1598_s1 + $0x48] sm:$0xff]  ;;  %s1617_s18 = smov (!%p389_p2, %s1382_s18), 2  ;;  %s1315_s29 = smov 112   ;;  %vm822_vm2 = vcmask 130048  }
  0x2d   : > { %v1161_v9 = vpack.c.bf16 %v402_v7, %v398_v6  ;;  %v404_v11 = vld [vmem:[%s1598_s1 + $0x30] sm:$0xff]  ;;  %v411_v14 = vld [vmem:[%s1598_s1 + $0x68] sm:$0xff]  ;;  %v409_v15 = vld [vmem:[%s1598_s1 + $0x58] sm:$0xff]  ;;  %s1065_s12 = sshll.u32 %s1617_s18, 3  ;;  %vm909_vm3 = vcmask 1043456   ;;  %vm905_vm4 = vcmask 31744  }
  0x2e   : > { %1160 = vmatprep.subr.bf16.mxu0 %v1159_v4  ;;  %v1177_v13 = vpack.c.bf16 %v404_v11, %v400_v10  ;;  %v413_v16 = vld [vmem:[%s1598_s1 + $0x78] sm:$0xff]  ;;  %1176 = vmatprep.subr.bf16.mxu1 %v1175_v8  ;;  %v1163_v17 = vpack.c.bf16 %v411_v14, %v407_v12  ;;  %v406_v19 = vld [vmem:[%s1598_s1 + $0x40] sm:$0xff]  ;;  %v408_v21 = vld [vmem:[%s1598_s1 + $0x50] sm:$0xff]  ;;  %s392_s15 = scalar_lea.vmem %s1597_s0, %s1065_s12 }
  0x2f   : > { %1162 = vmatpush1.bf16.msra.mxu0 %v1161_v9  ;;  %v1179_v18 = vpack.c.bf16 %v413_v16, %v409_v15  ;;  %v410_v20 = vld [vmem:[%s1598_s1 + $0x60] sm:$0xff]  ;;  %v412_v23 = vld [vmem:[%s1598_s1 + $0x70] sm:$0xff]  ;;  %v415_v24 = vld [vmem:[%s1598_s1 + $0x88] sm:$0xff] }
  0x30   : > { %1178 = vmatpush1.bf16.msra.mxu1 %v1177_v13  ;;  %v1165_v22 = vpack.c.bf16 %v410_v20, %v406_v19  ;;  %v419_v25 = vld [vmem:[%s1598_s1 + $0xa8] sm:$0xff]  ;;  %1164 = vmatprep.subr.bf16.mxu0 %v1163_v17  ;;  %v1181_v26 = vpack.c.bf16 %v412_v23, %v408_v21  ;;  %v417_v28 = vld [vmem:[%s1598_s1 + $0x98] sm:$0xff]  ;;  %v414_v30 = vld [vmem:[%s1598_s1 + $0x80] sm:$0xff] }
  0x31   : > { %1180 = vmatprep.subr.bf16.mxu1 %v1179_v18  ;;  %v1167_v27 = vpack.c.bf16 %v419_v25, %v415_v24  ;;  %v421_v29 = vld [vmem:[%s1598_s1 + $0xb8] sm:$0xff]  ;;  %v418_v32 = vld [vmem:[%s1598_s1 + $0xa0] sm:$0xff]  ;;  %v416_v33 = vld [vmem:[%s1598_s1 + $0x90] sm:$0xff] }
  0x32   : > { %v1183_v31 = vpack.c.bf16 %v421_v29, %v417_v28  ;;  %v420_v34 = vld [vmem:[%s1598_s1 + $0xb0] sm:$0xff]  ;;  %v1169_v35 = vpack.c.bf16 %v418_v32, %v414_v30  ;;  %v423_v36 = vld [vmem:[%s1598_s1 + $0xc8] sm:$0xff]  ;;  %v425_v38 = vld [vmem:[%s1598_s1 + $0xd8] sm:$0xff] }
  0x33   : > { %1166 = vmatpush1.bf16.msra.mxu0 %v1165_v22  ;;  %v427_v37 = vld [vmem:[%s1598_s1 + $0xe8] sm:$0xff]  ;;  %v1185_v39 = vpack.c.bf16 %v420_v34, %v416_v33  ;;  %v429_v41 = vld [vmem:[%s1598_s1 + $0xf8] sm:$0xff]  ;;  %v422_v42 = vld [vmem:[%s1598_s1 + $0xc0] sm:$0xff] }
  0x34   : > { %1182 = vmatpush1.bf16.msra.mxu1 %v1181_v26  ;;  %1168 = vmatprep.subr.bf16.mxu0 %v1167_v27  ;;  %v1171_v40 = vpack.c.bf16 %v427_v37, %v423_v36  ;;  %v426_v43 = vld [vmem:[%s1598_s1 + $0xe0] sm:$0xff]  ;;  %v1187_v44 = vpack.c.bf16 %v429_v41, %v425_v38  ;;  %v424_v45 = vld [vmem:[%s1598_s1 + $0xd0] sm:$0xff]  ;;  %v621_v48 = vld [vmem:[#allocation2 + $0x88] sm:$0xff] }
  0x35   : > { %1184 = vmatprep.subr.bf16.mxu1 %v1183_v31  ;;  %v428_v46 = vld [vmem:[%s1598_s1 + $0xf0] sm:$0xff]  ;;  %v620_v47 = vld [vmem:[#allocation2 + $0x80] sm:$0xff]  ;;  %v1173_v49 = vpack.c.bf16 %v426_v43, %v422_v42  ;;  %v605_v53 = vld [vmem:[#allocation2 + $0x8] sm:$0xff] }
  0x36   : > { %v1189_v50 = vpack.c.bf16 %v428_v46, %v424_v45  ;;  %v1191_v51 = vpack.c.bf16 %v621_v48, %v620_v47  ;;  %v604_v52 = vld [vmem:[#allocation2] sm:$0xff]  ;;  %v622_v54 = vld [vmem:[#allocation2 + $0x90] sm:$0xff]  ;;  %v623_v55 = vld [vmem:[#allocation2 + $0x98] sm:$0xff] }
  0x37   : > { %1170 = vmatpush1.bf16.msra.mxu0 %v1169_v35  ;;  %v397_v56 = vld [vmem:[%s392_s15] sm:$0xff]  ;;  %v1193_v57 = vpack.c.bf16 %v605_v53, %v604_v52  ;;  %v1195_v58 = vpack.c.bf16 %v623_v55, %v622_v54  ;;  %v606_v59 = vld [vmem:[#allocation2 + $0x10] sm:$0xff]  ;;  %v607_v60 = vld [vmem:[#allocation2 + $0x18] sm:$0xff]  ;;  %v432_v35 = vlaneseq }
  0x38   : > { %1186 = vmatpush1.bf16.msra.mxu1 %v1185_v39  ;;  %1172 = vmatprep.subr.bf16.mxu0 %v1171_v40  ;;  %v624_v61 = vld [vmem:[#allocation2 + $0xa0] sm:$0xff]  ;;  %v625_v62 = vld [vmem:[#allocation2 + $0xa8] sm:$0xff]  ;;  %v1197_v63 = vpack.c.bf16 %v607_v60, %v606_v59  ;;  %v626_v4 = vld [vmem:[#allocation2 + $0xb0] sm:$0xff] }
  0x39   : > { %1188 = vmatprep.subr.bf16.mxu1 %v1187_v44  ;;  %v1199_v1 = vpack.c.bf16 %v625_v62, %v624_v61  ;;  %v608_v2 = vld [vmem:[#allocation2 + $0x20] sm:$0xff]  ;;  %v609_v3 = vld [vmem:[#allocation2 + $0x28] sm:$0xff]  ;;  %v627_v5 = vld [vmem:[#allocation2 + $0xb8] sm:$0xff]  ;;  %v433_v36 = vshrl.u32 %v432_v35, 7 }
  0x3a   : > { %v1201_v6 = vpack.c.bf16 %v609_v3, %v608_v2  ;;  %v1203_v7 = vpack.c.bf16 %v627_v5, %v626_v4  ;;  %v610_v8 = vld [vmem:[#allocation2 + $0x30] sm:$0xff]  ;;  %v611_v9 = vld [vmem:[#allocation2 + $0x38] sm:$0xff]  ;;  %v628_v10 = vld [vmem:[#allocation2 + $0xc0] sm:$0xff] }
  0x3b   : > { %1174 = vmatpush1.bf16.msra.mxu0 %v1173_v49  ;;  %v629_v11 = vld [vmem:[#allocation2 + $0xc8] sm:$0xff]  ;;  %v1205_v12 = vpack.c.bf16 %v611_v9, %v610_v8  ;;  %v612_v14 = vld [vmem:[#allocation2 + $0x40] sm:$0xff]  ;;  %v630_v16 = vld [vmem:[#allocation2 + $0xd0] sm:$0xff]  ;;  %v434_v37 = vsub.s32 0, %v433_v36  ;;  %v442_v39 = vsub.s32 2, %v433_v36  ;;  %v438_v40 = vsub.s32 1, %v433_v36 }
  0x3c   : > { %1190 = vmatpush1.bf16.msra.mxu1 %v1189_v50  ;;  %1192 = vmatprep.subr.bf16.mxu0 %v1191_v51  ;;  %v1207_v13 = vpack.c.bf16 %v629_v11, %v628_v10  ;;  %v613_v15 = vld [vmem:[#allocation2 + $0x48] sm:$0xff]  ;;  %v631_v17 = vld [vmem:[#allocation2 + $0xd8] sm:$0xff]  ;;  %v614_v20 = vld [vmem:[#allocation2 + $0x50] sm:$0xff]  ;;  %v446_v41 = vsub.s32 3, %v433_v36 }
  0x3d   : > { %v1209_v18 = vpack.c.bf16 %v613_v15, %v612_v14  ;;  %v1211_v19 = vpack.c.bf16 %v631_v17, %v630_v16  ;;  %v615_v21 = vld [vmem:[#allocation2 + $0x58] sm:$0xff]  ;;  %v632_v23 = vld [vmem:[#allocation2 + $0xe0] sm:$0xff]  ;;  %v633_v24 = vld [vmem:[#allocation2 + $0xe8] sm:$0xff] }
  0x3e   : > { %1067 = vmatmul.mubr.msk.f32.vlgmr.msra.gmra.mrb[0].mxu0 %vm452_vm0, %v397_v56  ;;  %v1213_v22 = vpack.c.bf16 %v615_v21, %v614_v20  ;;  %v1215_v25 = vpack.c.bf16 %v633_v24, %v632_v23  ;;  %v616_v26 = vld [vmem:[#allocation2 + $0x60] sm:$0xff]  ;;  %v617_v27 = vld [vmem:[#allocation2 + $0x68] sm:$0xff]  ;;  %v634_v29 = vld [vmem:[#allocation2 + $0xf0] sm:$0xff] }
  0x3f   : > { %1068 = vmatmul.mubr.msk.f32.vlgmr.msra.gmra.mrb[0].mxu1 %vm452_vm0, %v397_v56  ;;  %1194 = vmatpush3.bf16.msra.mxu0 %v1193_v57  ;;  %v1217_v28 = vpack.c.bf16 %v617_v27, %v616_v26  ;;  %v635_v30 = vld [vmem:[#allocation2 + $0xf8] sm:$0xff]  ;;  %v618_v32 = vld [vmem:[#allocation2 + $0x70] sm:$0xff]  ;;  %v430_v38 = vld [vmem:[%s1599_s2] sm:$0xf] }
  0x40   : > { %1196 = vmatprep.subr.bf16.mxu0 %v1195_v58  ;;  %v1219_v31 = vpack.c.bf16 %v635_v30, %v634_v29  ;;  %v619_v33 = vld [vmem:[#allocation2 + $0x78] sm:$0xff]  ;;  %v435_v42 = vrot.slane %v430_v38, %v434_v37  ;;  %v443_v43 = vrot.slane %v430_v38, %v442_v39  ;;  %v439_v44 = vrot.slane %v430_v38, %v438_v40  ;;  %v719_v60 = vld [vmem:[%s1602_s5] sm:$0xff]  ;;  %v720_v61 = vld [vmem:[%s1602_s5 + $0x8] sm:$0xff] }
  0x41   : > { %v1221_v34 = vpack.c.bf16 %v619_v33, %v618_v32  ;;  %v447_v45 = vrot.slane %v430_v38, %v446_v41  ;;  %v721_v62 = vld [vmem:[%s1602_s5 + $0x10] sm:$0xff]  ;;  %v722_v2 = vld [vmem:[%s1602_s5 + $0x18] sm:$0xff]  ;;  %v723_v4 = vld [vmem:[%s1602_s5 + $0x20] sm:$0xff]  ;;  %1144 = vmatprep.mubr.msk.f32.mxu1 %vm1313_vm1, %v1311_v0 }
  0x42   : > { %v1227_v3 = vpack.c.bf16 %v722_v2, %v721_v62  ;;  %v724_v5 = vld [vmem:[%s1602_s5 + $0x28] sm:$0xff]  ;;  %v726_v8 = vld [vmem:[%s1602_s5 + $0x38] sm:$0xff]  ;;  %v1070_v21 = vld [vmem:[%s1603_s6] ss:$0 sm:$0xff] }
  0x43   : > { %1198 = vmatpush3.bf16.msra.mxu0 %v1197_v63  ;;  %v1312_v63 = vmov 0.0|0.0   ;;  %v1072_v29 = vld [vmem:[%s1605_s8] ss:$0 sm:$0xff] }
  0x44   : > { %1200 = vmatprep.subr.bf16.mxu0 %v1199_v1  ;;  %1223 = vmatprep.subr.bf16.mxu1 %v1312_v63  ;;  %v1224_v1 = vpack.c.bf16 %v720_v61, %v719_v60 }
  0x46   : > { %1225 = vmatpush3.bf16.msra.mxu1 %v1224_v1 }
  0x47   : > { %1202 = vmatpush3.bf16.msra.mxu0 %v1201_v6  ;;  %1226 = vmatprep.subr.bf16.mxu1 %v1312_v63  ;;  %v1230_v6 = vpack.c.bf16 %v724_v5, %v723_v4 }
  0x48   : > { %1204 = vmatprep.subr.bf16.mxu0 %v1203_v7  ;;  %v725_v7 = vld [vmem:[%s1602_s5 + $0x30] sm:$0xff] }
  0x49   : > { %v1233_v9 = vpack.c.bf16 %v726_v8, %v725_v7 }
  0x4a   : > { %1228 = vmatpush3.bf16.msra.mxu1 %v1227_v3 }
  0x4b   : > { %1206 = vmatpush3.bf16.msra.mxu0 %v1205_v12  ;;  %1229 = vmatprep.subr.bf16.mxu1 %v1312_v63  ;;  %v1069_v12 = vld [vmem:[%s1601_s4] ss:$0 sm:$0xff] }
  0x4c   : > { %1208 = vmatprep.subr.bf16.mxu0 %v1207_v13 }
  0x4e   : > { %1231 = vmatpush3.bf16.msra.mxu1 %v1230_v6 }
  0x4f   : > { %1210 = vmatpush3.bf16.msra.mxu0 %v1209_v18  ;;  %1232 = vmatprep.subr.bf16.mxu1 %v1312_v63  ;;  %v813_v18 = vld [vmem:[%s1604_s7] sm:$0xff] }
  0x50   : > { %1212 = vmatprep.subr.bf16.mxu0 %v1211_v19  ;;  %v814_v19 = vld [vmem:[%s1604_s7 + $0x8] sm:$0xff] }
  0x51   : > { %v1236_v20 = vpack.c.bf16 %v814_v19, %v813_v18 }
  0x52   : > { %1234 = vmatpush3.bf16.msra.mxu1 %v1233_v9 }
  0x53   : > { %1214 = vmatpush3.bf16.msra.mxu0 %v1213_v22  ;;  %1235 = vmatprep.subr.bf16.mxu1 %v1312_v63 }
  0x54   : > { %1216 = vmatprep.subr.bf16.mxu0 %v1215_v25 }
  0x57   : > { %1218 = vmatpush3.bf16.msra.mxu0 %v1217_v28  ;;  %v897_v28 = vld [vmem:[%s1606_s9] sm:$0xf] }
  0x58   : > { %1220 = vmatprep.subr.bf16.mxu0 %v1219_v31 }
  0x5b   : > { %1222 = vmatpush3.bf16.msra.mxu0 %v1221_v34 }
 0x111   : > { %v522_v46 = vpop.f32.mrb[0].mxu0 }
 0x112   : > { %v523_v47 = vadd.f32 %v522_v46, %v435_v42  ;;  %v593_v48 = vpop.f32.mrb[0].mxu1  ;;  %v524_v49 = vpop.f32.mrb[1].mxu0 }
 0x113   : > { %v594_v50 = vadd.f32 %v593_v48, %v443_v43  ;;  %v525_v51 = vadd.f32 %v524_v49, %v439_v44  ;;  %v595_v52 = vpop.f32.mrb[1].mxu1 }
 0x114   : > { %v598_v53 = vmax.f32 %v523_v47, 0.0  ;;  %v596_v54 = vadd.f32 %v595_v52, %v447_v45 }
 0x115   : > { %v600_v55 = vmax.f32 %v594_v50, 0.0  ;;  %v599_v56 = vmax.f32 %v525_v51, 0.0 }
 0x116   : > { %v601_v57 = vmax.f32 %v596_v54, 0.0 }
 0x117   : > { %v602_v58 = vmax.f32 %v598_v53, %v600_v55 }
 0x118   : > { %v603_v59 = vmax.f32 %v599_v56, %v601_v57 }
 0x11a   : > { %707 = vmatprep.mubr.f32.mxu0 %v603_v59 }
 0x11b   : > { %708 = vmatmul.mubr.f32.vlgmr.msra.gmra.mrb[2].mxu0 %v602_v58 }
 0x1ee   : > { %v1111_v10 = vpop.f32.mrb[2].mxu0 }
 0x1ef   : > { %v1112_v11 = vpop.f32.mrb[3].mxu0 }
 0x1f0   : > { %v1113_v13 = vadd.f32 %v1112_v11, %v1111_v10 }
 0x1f2   : > { %v710_v14 = vadd.f32 %v1113_v13, %v1069_v12 }
 0x1f4   : > { %v713_v15 = vmax.f32 %v710_v14, 0.0 }
 0x1f6   : > { %715 = vrot.lane.b32.xlu0 %v713_v15, %s1314_s21  ;;  %s396_s21 = scalar_lea.vmem %s1608_s11, %s1065_s12 }
 0x268   : > { %v716_v16 = vpop.permute.xlu0 %715 }
 0x269   : > { %v718_v17 = vmax.f32 %v713_v15, %v716_v16 }
 0x26b   : > { %1145 = vmatmul.mubr.msk.f32.vlgmr.msra.gmra.mrb[2].mxu1 %vm452_vm0, %v718_v17 }
 0x26c   : > { %1151 = vmatprep.mubr.msk.f32.mxu1 %vm1313_vm1, %v1311_v0  ;;  %1237 = vmatpush3.bf16.msra.mxu1 %v1236_v20 }
 0x26d   : > { %1154 = vmatprep.subr.mxu1 %v1311_v0 }
 0x33e   : > { %v803_v22 = vpop.f32.mrb[2].mxu1 }
 0x33f   : > { %v804_v23 = vadd.f32 %v1070_v21, %v803_v22  ;;  %v1146_v24 = vpop.f32.mrb[3].mxu1 }
 0x341   : > { %v807_v25 = vmax.f32 %v804_v23, 0.0 }
 0x343   : > { %809 = vrot.lane.b32.xlu0 %v807_v25, %s1315_s29 }
 0x3b5   : > { %v810_v26 = vpop.permute.xlu0 %809 }
 0x3b6   : > { %v812_v27 = vmax.f32 %v807_v25, %v810_v26 }
 0x3b8   : > { %1152 = vmatmul.mubr.msk.f32.vlgmr.msra.gmra.mrb[4].mxu1 %vm822_vm2, %v812_v27 }
 0x3b9   : > { %1156 = vmatprep.mubr.msk.f32.mxu1 %vm1313_vm1, %v1311_v0  ;;  %1155 = vmatpush3.msk.msra.mxu1 %vm909_vm3, %v897_v28  ;;  %v1074_v0 = vld [vmem:[%s1607_s10] ss:$0 sm:$0xff] }
 0x48b   : > { %v892_v30 = vpop.f32.mrb[4].mxu1 }
 0x48c   : > { %v893_v31 = vadd.f32 %v1072_v29, %v892_v30  ;;  %v1153_v32 = vpop.f32.mrb[5].mxu1 }
 0x48e   : > { %v896_v33 = vmax.f32 %v893_v31, 0.0 }
 0x490   : > { %1157 = vmatmul.mubr.msk.f32.vlgmr.msra.gmra.mrb[6].mxu1 %vm905_vm4, %v896_v33 }
 0x563   : > { %v979_v34 = vpop.f32.mrb[6].mxu1 }
 0x564   : > { %v980_v35 = vadd.f32 %v1074_v0, %v979_v34  ;;  %v1158_v36 = vpop.f32.mrb[7].mxu1 }
 0x566   : > { %983 = vmax.xlane.f32.xlu1 %v980_v35 }
 0x5f3   : > { %v984_v37 = vpop.xlane.xlu1 %983 }
 0x5f4   : > { %v985_v38 = vsub.f32 %v980_v35, %v984_v37 }
 0x5f6   : > { %v986_v39 = vmul.f32 1.442695, %v985_v38 }
 0x5f8   : > { %1264 = vpow2.f32 %v986_v39 }
 0x602   : > { %v1265_v40 = vpop.eup %1264 }
 0x603   : > { %988 = vadd.xlane.f32.xlu1 %v1265_v40 }
 0x690   : > { %v989_v41 = vpop.xlane.xlu1 %988 }
 0x691   : > { %1266 = vrcp.f32 %v989_v41 }
 0x69b   : > { %v1267_v42 = vpop.eup %1266 }
 0x69c   : > { %v991_v43 = vmul.f32 %v1267_v42, %v1265_v40 }
 0x69e   : > { %992 = vst [vmem:[%s396_s21] sm:$0xff] %v991_v43 }
 0x69f PF: > { %s22_s17 = sadd.s32 1, %s1306_s17  }
 0x6a0   : > { %p19_p3 = scmp.ge.s32.totalorder %s22_s17, 5  }
 0x6a2   :  { %21 = sbr.rel (!%p19_p3) target bundleno = 1 (0x1), region = 99 }
 0x6a9   :  { %1012 = vsyncpa [#allocation3], 1 }
 0x6aa   :  { %1014 = vsyncpa [#allocation3 + $0x1], 1 }

</bundles_post_ra>
